<compile_context>
chip_gen: v7x
topology: tpu7x:2x2x1
jax: 0.10.0
libtpu: 0.0.40
codegen_flags: <defaults>
</compile_context>

<pallas_src>
import functools

import jax
import jax.numpy as jnp
import numpy as np
from jax import lax
from jax.experimental import pallas as pl
from jax.experimental.pallas import tpu as pltpu

_SUB = 8                          # sublanes per vreg
_LANE = 128                       # lanes per vreg
_DEFAULT_MAX_BLOCK_ROWS = 8192    # (8192, 128) f32 block = 4 MiB per input
_VMEM_LIMIT_BYTES = 32 << 20      # 16 MiB of double-buffered inputs + slack


def _cdiv(a, b):
    return (a + b - 1) // b


def _bce_elementwise(p, t):
    """Per-element BCE with torch.nn.BCELoss's -100 log clamp."""
    p = p.astype(jnp.float32)
    t = t.astype(jnp.float32)
    return -(t * jnp.maximum(jnp.log(p), -100.0)
             + (1.0 - t) * jnp.maximum(jnp.log(1.0 - p), -100.0))


def _bce_partial_kernel(p_ref, t_ref, out_ref, *, rows, block_rows, num_blocks):
    """Accumulate BCE partial sums into a resident (8, 128) output block."""
    i = pl.program_id(0)

    @pl.when(i == 0)
    def _():
        out_ref[...] = jnp.zeros_like(out_ref)

    # In-kernel casts: inputs stream at their native (possibly narrow) dtype.
    p = p_ref[...].astype(jnp.float32)
    t = t_ref[...].astype(jnp.float32)

    # torch.nn.BCELoss clamps the log terms at -100.
    log_p = jnp.maximum(jnp.log(p), -100.0)
    log_1mp = jnp.maximum(jnp.log(1.0 - p), -100.0)
    loss = -(t * log_p + (1.0 - t) * log_1mp)

    def accumulate(x):
        if block_rows % _SUB == 0:
            # Fold to an (8, 128) vreg-shaped partial: pure VPU vreg adds.
            out_ref[...] += jnp.sum(
                x.reshape(block_rows // _SUB, _SUB, _LANE), axis=0)
        else:
            # Tiny-input path: a single block covering the whole array.
            out_ref[0:1, :] += jnp.sum(x, axis=0, keepdims=True)

    last_rows = rows - (num_blocks - 1) * block_rows  # rows in the last block
    if last_rows == block_rows:
        # Grid divides evenly: no mask code is emitted at all.
        accumulate(loss)
    else:
        # Only the final (partial) block pays for the row mask; full blocks
        # take the mask-free path.
        @pl.when(i < num_blocks - 1)
        def _():
            accumulate(loss)

        @pl.when(i == num_blocks - 1)
        def _():
            row_ids = lax.broadcasted_iota(jnp.int32, (block_rows, _LANE), 0)
            accumulate(jnp.where(row_ids < last_rows, loss, 0.0))


@functools.partial(jax.jit, static_argnames=("max_block_rows",))
def bce_loss_pallas(pred, target, *, max_block_rows=_DEFAULT_MAX_BLOCK_ROWS):
    """Mean BCE (probabilities vs. targets) computed with a Pallas TPU kernel."""
    n = pred.size
    p = pred.reshape(-1)
    t = target.reshape(-1)

    rows = n // _LANE           # full 128-wide rows streamed by the kernel
    rem = n - rows * _LANE      # < 128 ragged tail handled in the wrapper

    total = jnp.float32(0.0)

    if rem:
        # Tiny (< 128 element) ragged tail: plain jnp, no full-array pad/copy.
        total = total + jnp.sum(
            _bce_elementwise(p[rows * _LANE:], t[rows * _LANE:]))

    if rows:
        if rem:
            p2 = p[: rows * _LANE].reshape(rows, _LANE)
            t2 = t[: rows * _LANE].reshape(rows, _LANE)
        else:
            p2 = p.reshape(rows, _LANE)   # free reshape of a contiguous array
            t2 = t.reshape(rows, _LANE)

        # Biggest lane-dense block that fits comfortably in VMEM; a single
        # full-extent block (legal even if rows % 8 != 0) for small inputs.
        block_rows = rows if rows <= max_block_rows else max_block_rows
        num_blocks = _cdiv(rows, block_rows)

        kernel = functools.partial(
            _bce_partial_kernel,
            rows=rows, block_rows=block_rows, num_blocks=num_blocks)

        partials = pl.pallas_call(
            kernel,
            out_shape=jax.ShapeDtypeStruct((_SUB, _LANE), jnp.float32),
            grid_spec=pltpu.PrefetchScalarGridSpec(
                num_scalar_prefetch=0,
                grid=(num_blocks,),
                in_specs=[
                    pl.BlockSpec((block_rows, _LANE), lambda i: (i, 0)),
                    pl.BlockSpec((block_rows, _LANE), lambda i: (i, 0)),
                ],
                out_specs=pl.BlockSpec((_SUB, _LANE), lambda i: (0, 0)),
            ),
            compiler_params=pltpu.CompilerParams(
                dimension_semantics=("arbitrary",),
                vmem_limit_bytes=_VMEM_LIMIT_BYTES),
        )(p2, t2)

        total = total + jnp.sum(partials)

    return total / jnp.float32(n)


def tomo_loss_forward(outputs, batch, epoch=0, phase="train", num_stacks=1):
    """Mirror of TomoLoss.forward: only the last stack's 'class' head is used."""
    del epoch, phase
    output = outputs[num_stacks - 1]
    bce_loss = bce_loss_pallas(output["class"], batch["class"])
    loss_stats = {"loss": bce_loss}
    return bce_loss, loss_stats


def _bce_ref(pred, target):
    """Pure-JAX reference with the same -100 clamp as torch.nn.BCELoss."""
    return jnp.mean(_bce_elementwise(pred, target))


if __name__ == "__main__":
    key = jax.random.PRNGKey(0)

    def make_case(k, shape):
        k1, k2 = jax.random.split(k)
        pred = jax.nn.sigmoid(jax.random.normal(k1, shape, dtype=jnp.float32))
        tgt = (jax.random.uniform(k2, shape) > 0.5).astype(jnp.float32)
        return pred, tgt

    k0, k1, k2, k3 = jax.random.split(key, 4)

    # Primary case: NCHW class-probability map, batch=2, channels=1, 16x16.
    pred, tgt = make_case(k0, (2, 1, 16, 16))
    num_stacks = 2
    outputs = [{"class": pred} for _ in range(num_stacks)]
    batch = {"class": tgt}
    loss, loss_stats = tomo_loss_forward(outputs, batch, epoch=0,
                                         phase="train", num_stacks=num_stacks)
    loss = jax.block_until_ready(loss)
    np.testing.assert_allclose(np.asarray(loss), np.asarray(_bce_ref(pred, tgt)),
                               rtol=1e-5, atol=1e-5)
    assert np.isfinite(np.asarray(loss_stats["loss"]))

    # Coverage: numel not a multiple of 128 -> wrapper tail, no pad/copy.
    pred2, tgt2 = make_case(k1, (2, 3, 17, 19))
    l2 = jax.block_until_ready(bce_loss_pallas(pred2, tgt2))
    np.testing.assert_allclose(np.asarray(l2), np.asarray(_bce_ref(pred2, tgt2)),
                               rtol=1e-5, atol=1e-5)

    # Coverage: multiple blocks with a partial last block (pl.when mask path),
    # exercised via a small max_block_rows (rows=18, block_rows=8).
    pred3, tgt3 = make_case(k2, (2, 2, 24, 24))
    l3 = jax.block_until_ready(bce_loss_pallas(pred3, tgt3, max_block_rows=8))
    np.testing.assert_allclose(np.asarray(l3), np.asarray(_bce_ref(pred3, tgt3)),
                               rtol=1e-5, atol=1e-5)

    # Coverage: multiple blocks that divide evenly (mask-free static path).
    pred4, tgt4 = make_case(k3, (1, 1, 32, 128))
    l4 = jax.block_until_ready(bce_loss_pallas(pred4, tgt4, max_block_rows=8))
    np.testing.assert_allclose(np.asarray(l4), np.asarray(_bce_ref(pred4, tgt4)),
                               rtol=1e-5, atol=1e-5)

    print("KERNEL_OK")
</pallas_src>

<mosaic_0001>
module attributes {stable_mosaic.version = 11 : i64} {
  func.func @_bce_partial_kernel(%arg0: i32, %arg1: memref<4x128xf32, #tpu.memory_space<vmem>>, %arg2: memref<4x128xf32, #tpu.memory_space<vmem>>, %arg3: memref<8x128xf32, #tpu.memory_space<vmem>>) attributes {dimension_semantics = [#tpu.dimension_semantics<arbitrary>], iteration_bounds = array<i64: 1>, scalar_prefetch = 0 : i64, scratch_operands = 0 : i64, tpu.core_type = #tpu.core_type<tc>, window_params = [{transform_indices = @transform_0, window_bounds = array<i64: 4, 128>}, {transform_indices = @transform_1, window_bounds = array<i64: 4, 128>}, {pipeline_mode = #tpu.pipeline_mode<synchronous>, transform_indices = @transform_2, window_bounds = array<i64: 8, 128>}]} {
    %c0_i32 = arith.constant 0 : i32
    %0 = arith.cmpi eq, %arg0, %c0_i32 : i32
    %1 = arith.extui %0 : i1 to i32
    %c0_i32_0 = arith.constant 0 : i32
    %2 = arith.cmpi ne, %1, %c0_i32_0 : i32
    scf.if %2 {
      %cst_13 = arith.constant 0.000000e+00 : f32
      %25 = vector.broadcast %cst_13 : f32 to vector<8x128xf32>
      %c0_14 = arith.constant 0 : index
      %c0_15 = arith.constant 0 : index
      %26 = vector.load %arg3[%c0_14, %c0_15] : memref<8x128xf32, #tpu.memory_space<vmem>>, vector<8x128xf32>
      tpu.vector_store %arg3[%c0_14, %c0_15], %25 {strides = array<i32>} : memref<8x128xf32, #tpu.memory_space<vmem>>, vector<8x128xf32>,
    } else {
    }
    %c0 = arith.constant 0 : index
    %c0_1 = arith.constant 0 : index
    %3 = vector.load %arg1[%c0, %c0_1] : memref<4x128xf32, #tpu.memory_space<vmem>>, vector<4x128xf32>
    %c0_2 = arith.constant 0 : index
    %c0_3 = arith.constant 0 : index
    %4 = vector.load %arg2[%c0_2, %c0_3] : memref<4x128xf32, #tpu.memory_space<vmem>>, vector<4x128xf32>
    %5 = math.log %3 : vector<4x128xf32>
    %cst = arith.constant -1.000000e+02 : f32
    %6 = vector.broadcast %cst : f32 to vector<4x128xf32>
    %7 = arith.maximumf %5, %6 : vector<4x128xf32>
    %cst_4 = arith.constant 1.000000e+00 : f32
    %8 = vector.broadcast %cst_4 : f32 to vector<4x128xf32>
    %9 = arith.subf %8, %3 : vector<4x128xf32>
    %10 = math.log %9 : vector<4x128xf32>
    %cst_5 = arith.constant -1.000000e+02 : f32
    %11 = vector.broadcast %cst_5 : f32 to vector<4x128xf32>
    %12 = arith.maximumf %10, %11 : vector<4x128xf32>
    %13 = arith.mulf %4, %7 : vector<4x128xf32>
    %cst_6 = arith.constant 1.000000e+00 : f32
    %14 = vector.broadcast %cst_6 : f32 to vector<4x128xf32>
    %15 = arith.subf %14, %4 : vector<4x128xf32>
    %16 = arith.mulf %15, %12 : vector<4x128xf32>
    %17 = arith.addf %13, %16 : vector<4x128xf32>
    %cst_7 = arith.constant 0.000000e+00 : f32
    %18 = vector.broadcast %cst_7 : f32 to vector<4x128xf32>
    %19 = arith.subf %18, %17 : vector<4x128xf32>
    %c0_8 = arith.constant 0 : index
    %c0_9 = arith.constant 0 : index
    %20 = vector.load %arg3[%c0_8, %c0_9] : memref<8x128xf32, #tpu.memory_space<vmem>>, vector<1x128xf32>
    %cst_10 = arith.constant dense<0.000000e+00> : vector<128xf32>
    %21 = vector.multi_reduction <add>, %19, %cst_10 [0] : vector<4x128xf32> to vector<128xf32>
    %22 = vector.shape_cast %21 : vector<128xf32> to vector<1x128xf32>
    %23 = arith.addf %20, %22 : vector<1x128xf32>
    %c0_11 = arith.constant 0 : index
    %c0_12 = arith.constant 0 : index
    %24 = vector.load %arg3[%c0_11, %c0_12] : memref<8x128xf32, #tpu.memory_space<vmem>>, vector<1x128xf32>
    tpu.vector_store %arg3[%c0_11, %c0_12], %23 {strides = array<i32>} : memref<8x128xf32, #tpu.memory_space<vmem>>, vector<1x128xf32>,
    return
  }
  func.func @transform_0(%arg0: i32) -> (i32, i32) {
    %c0_i32 = arith.constant 0 : i32
    %c0_i32_0 = arith.constant 0 : i32
    return %arg0, %c0_i32 : i32, i32
  }
  func.func @transform_1(%arg0: i32) -> (i32, i32) {
    %c0_i32 = arith.constant 0 : i32
    %c0_i32_0 = arith.constant 0 : i32
    return %arg0, %c0_i32 : i32, i32
  }
  func.func @transform_2(%arg0: i32) -> (i32, i32) {
    %c0_i32 = arith.constant 0 : i32
    %c0_i32_0 = arith.constant 0 : i32
    %c0_i32_1 = arith.constant 0 : i32
    return %c0_i32, %c0_i32_0 : i32, i32
  }
}

</mosaic_0001>

<bundles_post_ra>
// kernel: bce_loss_pallas.1
= control target key start
LH: loop header
LB: loop body
LE: loop exit
PB: predicated region body
PF: predicated region fallthrough
CT: control target
= control target key end

     0   :  { %v50_v0 = vmov 0.0   ;;  %vm31_vm0 = vcmask 1043456   ;;  %s81_s2 = inlined_call_operand.vmem [shape: f32[8,128], index: 2, kind: output, shape index: {}]   ;;  %s82_s0 = inlined_call_operand.vmem [shape: f32[4,128], index: 0, kind: input, shape index: {}]   ;;  %s83_s1 = inlined_call_operand.vmem [shape: f32[4,128], index: 1, kind: input, shape index: {}]  }
   0x1   :  { %15 = vst [vmem:[%s81_s2] sm:$0xff] %v50_v0  ;;  %v16_v1 = vld [vmem:[%s82_s0] sm:$0xf] }
   0x2   :  { %46 = vlog2.f32 %v16_v1  ;;  %v21_v2 = vsub.f32 1.0, %v16_v1  ;;  %v17_v4 = vld [vmem:[%s83_s1] sm:$0xf] }
   0x3   :  { %v26_v9 = vsub.f32 1.0, %v17_v4 }
   0x4   :  { %48 = vlog2.f32 %v21_v2 }
   0x8   :  { %v30_v21 = vld [vmem:[%s81_s2] sm:$0x1] }
   0xc   :  { %v47_v3 = vpop.eup %46 }
   0xd   :  { %v19_v5 = vmul.f32 0.6931472, %v47_v3 }
   0xe   :  { %v49_v6 = vpop.eup %48 }
   0xf   :  { %v20_v7 = vmax.f32 %v19_v5, -100.0  ;;  %v23_v8 = vmul.f32 0.6931472, %v49_v6 }
  0x11   :  { %v24_v10 = vmax.f32 %v23_v8, -100.0  ;;  %v25_v11 = vmul.f32 %v20_v7, %v17_v4 }
  0x13   :  { %v27_v12 = vmul.f32 %v26_v9, %v24_v10 }
  0x15   :  { %v28_v13 = vadd.f32 %v27_v12, %v25_v11 }
  0x17   :  { %v29_v14 = vsub.f32 0.0, %v28_v13 }
  0x19   :  { %v32_v15 = vsel %vm31_vm0, %v29_v14, 0.0 }
  0x1a   :  { %v33_v16 = vrot.slane %v32_v15, 4 }
  0x1c   :  { %v34_v17 = vadd.f32 %v33_v16, %v32_v15 }
  0x1e   :  { %v35_v18 = vrot.slane %v34_v17, 2 }
  0x20   :  { %v36_v19 = vadd.f32 %v35_v18, %v34_v17 }
  0x22   :  { %v37_v20 = vrot.slane %v36_v19, 1 }
  0x24   :  { %v38_v22 = vadd.f32 %v37_v20, %v36_v19 }
  0x26   :  { %v39_v23 = vadd.f32 %v38_v22, %v30_v21 }
  0x28   :  { %40 = vst [vmem:[%s81_s2] sm:$0x1] %v39_v23 }

</bundles_post_ra>
